<compile_context>
chip_gen: v5e
topology: v5e:2x2
jax: 0.10.0
libtpu: 0.0.40
codegen_flags: <defaults>
</compile_context>

<pallas_src>
import functools
import math

import numpy as np
import jax
import jax.numpy as jnp
from jax import lax
from jax.experimental import pallas as pl
from jax.experimental.pallas import tpu as pltpu


@functools.lru_cache(maxsize=1)
def _vmem_limit_bytes():
    """Generation-aware scoped-VMEM cap: ~3/4 of physical, capped at 96 MiB."""
    try:
        cap = int(pltpu.get_tpu_info().vmem_capacity_bytes)
    except Exception:  # noqa: BLE001 - conservative fallback (safe even on v7x's 64 MiB)
        cap = 64 * 1024 * 1024
    return min(cap * 3 // 4, 96 * 1024 * 1024)


def _pick_tile(dim, target, align):
    """Largest multiple of `align` <= target that evenly divides dim; else full extent.
    Lane (last) dims that are not 128-multiples must be full-extent anyway."""
    if dim <= target:
        return dim
    t = (target // align) * align
    while t >= align:
        if dim % t == 0:
            return t
        t -= align
    return dim


# ----------------------------------------------------------------------------
# Tiled, pipelined  y = x @ W.T + b  (nn.Linear semantics), bf16 MXU operands,
# f32 accumulation.  W is the nn.Linear (out, in) layout -> contract last dims,
# no in-kernel transpose.
# ----------------------------------------------------------------------------
def _linear_body(x_ref, w_ref, b_ref, o_ref, acc):
    k = pl.program_id(2)

    @pl.when(k == 0)
    def _():
        acc[...] = jnp.zeros_like(acc)

    acc[...] += lax.dot_general(
        x_ref[...].astype(jnp.bfloat16),          # bf16 operands -> native MXU path
        w_ref[...].astype(jnp.bfloat16),
        dimension_numbers=(((1,), (1,)), ((), ())),
        preferred_element_type=jnp.float32,       # f32 accumulate
    )

    @pl.when(k == pl.num_programs(2) - 1)
    def _():
        o_ref[...] = (acc[...] + b_ref[...].astype(jnp.float32)).astype(o_ref.dtype)


def _linear_kernel_scratch(x_ref, w_ref, b_ref, o_ref, acc_ref):
    _linear_body(x_ref, w_ref, b_ref, o_ref, acc_ref)


def _linear_kernel_inplace(x_ref, w_ref, b_ref, o_ref):
    # f32 output: accumulate directly into the resident output block (no scratch).
    _linear_body(x_ref, w_ref, b_ref, o_ref, o_ref)


def linear(x, w, b, *, out_dtype=None, tm=512, tn=512, tk=512):
    """x: (M, K), w: (N, K) nn.Linear layout, b: (1, N) -> (M, N) in out_dtype."""
    M, K = x.shape
    N, K2 = w.shape
    assert K == K2 and b.shape == (1, N)
    out_dtype = out_dtype if out_dtype is not None else x.dtype

    # Harden the M (sublane) axis: pad to a tile multiple instead of silently
    # falling back to a huge full-extent block that could blow the VMEM budget.
    tm = min(tm, pl.cdiv(M, 8) * 8)
    Mp = pl.cdiv(M, tm) * tm
    xp = jnp.pad(x, ((0, Mp - M), (0, 0))) if Mp != M else x
    tn = _pick_tile(N, tn, 128)
    tk = _pick_tile(K, tk, 128)
    grid = (Mp // tm, N // tn, K // tk)

    f32_out = np.dtype(out_dtype) == np.dtype(np.float32)
    kernel = _linear_kernel_inplace if f32_out else _linear_kernel_scratch
    scratch = [] if f32_out else [pltpu.VMEM((tm, tn), jnp.float32)]

    cost = pl.CostEstimate(
        flops=2 * M * N * K,
        transcendentals=0,
        bytes_accessed=int(x.size * x.dtype.itemsize + w.size * w.dtype.itemsize
                           + b.size * b.dtype.itemsize + M * N * np.dtype(out_dtype).itemsize),
    )

    out = pl.pallas_call(
        kernel,
        out_shape=jax.ShapeDtypeStruct((Mp, N), out_dtype),
        grid_spec=pltpu.PrefetchScalarGridSpec(
            num_scalar_prefetch=0,
            grid=grid,
            in_specs=[
                pl.BlockSpec((tm, tk), lambda i, j, kk: (i, kk)),
                pl.BlockSpec((tn, tk), lambda i, j, kk: (j, kk)),
                pl.BlockSpec((1, tn), lambda i, j, kk: (0, j)),
            ],
            out_specs=pl.BlockSpec((tm, tn), lambda i, j, kk: (i, j)),
            scratch_shapes=scratch,
        ),
        compiler_params=pltpu.CompilerParams(
            dimension_semantics=("parallel", "parallel", "arbitrary"),
            vmem_limit_bytes=_vmem_limit_bytes(),
        ),
        cost_estimate=cost,
    )(xp, w, b)
    return out[:M] if Mp != M else out


# ----------------------------------------------------------------------------
# Flash-style scaled dot-product attention on the head-packed (B, S, H*d_k)
# layout: the KV axis is tiled with online softmax, so VMEM use is independent
# of S.  1/sqrt(d_k) is already folded into W_q at param-prep time.
# ----------------------------------------------------------------------------
def _attn_kernel(q_ref, k_ref, v_ref, o_ref, m_sc, l_sc, acc_sc, *, num_heads, d_k):
    kv_step = pl.program_id(2)

    @pl.when(kv_step == 0)
    def _():
        m_sc[...] = jnp.full_like(m_sc, -jnp.inf)
        l_sc[...] = jnp.zeros_like(l_sc)
        acc_sc[...] = jnp.zeros_like(acc_sc)

    q = q_ref[...]     # (tq,  H*d_k) bf16, heads packed along lanes
    kk = k_ref[...]    # (tkv, H*d_k) bf16
    vv = v_ref[...]    # (tkv, H*d_k) bf16

    # TODO(synk): with a head-major layout this loop would be one batched dot_general;
    # on the head-packed lane layout the static per-head slices avoid an in-kernel relayout.
    for h in range(num_heads):
        sl = slice(h * d_k, (h + 1) * d_k)
        s = lax.dot_general(                              # (tq, tkv) f32 scores
            q[:, sl], kk[:, sl],
            dimension_numbers=(((1,), (1,)), ((), ())),
            preferred_element_type=jnp.float32,
        )
        m_prev = m_sc[h]                                  # (tq, 1)
        m_new = jnp.maximum(m_prev, jnp.max(s, axis=-1, keepdims=True))
        alpha = jnp.exp(m_prev - m_new)
        p = jnp.exp(s - m_new)
        l_sc[h] = alpha * l_sc[h] + jnp.sum(p, axis=-1, keepdims=True)
        ctx = lax.dot_general(                            # (tq, d_k) f32
            p.astype(vv.dtype), vv[:, sl],
            dimension_numbers=(((1,), (0,)), ((), ())),
            preferred_element_type=jnp.float32,
        )
        acc_sc[:, sl] = alpha * acc_sc[:, sl] + ctx       # write straight into lane slice
        m_sc[h] = m_new

    @pl.when(kv_step == pl.num_programs(2) - 1)
    def _():
        for h in range(num_heads):
            sl = slice(h * d_k, (h + 1) * d_k)
            # Exact (non-approx) reciprocal for parity with the PyTorch reference.
            acc_sc[:, sl] = acc_sc[:, sl] * pl.reciprocal(l_sc[h], approx=False)
        o_ref[...] = acc_sc[...].astype(o_ref.dtype)      # single lane-dense store


def attention(q, k, v, num_heads, *, tq=512, tkv=512):
    """q, k, v: (B, S, H*d_k) head-packed bf16 -> (B, S, H*d_k) head-packed bf16."""
    B, S, d_model = q.shape
    d_k = d_model // num_heads
    # TODO(synk): if S is not a multiple of 8 this falls back to a single full-S block;
    # pad+mask the query axis for very large ragged S.
    tq = _pick_tile(S, tq, 8)
    tkv = _pick_tile(S, tkv, 8)
    kern = functools.partial(_attn_kernel, num_heads=num_heads, d_k=d_k)

    q_spec = pl.BlockSpec((None, tq, d_model), lambda b, qi, ki: (b, qi, 0))
    kv_spec = pl.BlockSpec((None, tkv, d_model), lambda b, qi, ki: (b, ki, 0))
    o_spec = pl.BlockSpec((None, tq, d_model), lambda b, qi, ki: (b, qi, 0))

    cost = pl.CostEstimate(
        flops=4 * B * S * S * d_model,
        transcendentals=B * num_heads * S * S,
        bytes_accessed=int((2 * q.size + 2 * (S // tq) * k.size) * q.dtype.itemsize),
    )

    return pl.pallas_call(
        kern,
        out_shape=jax.ShapeDtypeStruct((B, S, d_model), q.dtype),
        grid_spec=pltpu.PrefetchScalarGridSpec(
            num_scalar_prefetch=0,
            grid=(B, S // tq, S // tkv),
            in_specs=[q_spec, kv_spec, kv_spec],
            out_specs=o_spec,
            scratch_shapes=[
                pltpu.VMEM((num_heads, tq, 1), jnp.float32),   # running max  (m)
                pltpu.VMEM((num_heads, tq, 1), jnp.float32),   # running denom (l)
                pltpu.VMEM((tq, d_model), jnp.float32),        # context accumulator
            ],
        ),
        compiler_params=pltpu.CompilerParams(
            # Megacore shards only on batch: both cores never stream the same K/V.
            dimension_semantics=("parallel", "arbitrary", "arbitrary"),
            vmem_limit_bytes=_vmem_limit_bytes(),
        ),
        cost_estimate=cost,
    )(q, k, v)


# ----------------------------------------------------------------------------
# Param prep (hoisted out of the forward): bf16 weights, biases as (1, N) f32,
# 1/sqrt(d_k) folded into W_q / b_q so the attention kernel does no scaling.
# ----------------------------------------------------------------------------
def prepare_params(params, num_heads):
    d_model = params["wq"].shape[0]
    d_k = d_model // num_heads
    scale = 1.0 / math.sqrt(d_k)

    def wb(w, b, s=1.0):
        return (w * s).astype(jnp.bfloat16), (b * s).astype(jnp.float32).reshape(1, -1)

    wq, bq = wb(params["wq"], params["bq"], scale)
    wk, bk = wb(params["wk"], params["bk"])
    wv, bv = wb(params["wv"], params["bv"])
    wo, bo = wb(params["wo"], params["bo"])
    return {"wq": wq, "bq": bq, "wk": wk, "bk": bk,
            "wv": wv, "bv": bv, "wo": wo, "bo": bo}


# ----------------------------------------------------------------------------
# MultiHeadAttention forward (mirrors the PyTorch module, mask=None path)
# ----------------------------------------------------------------------------
def multi_head_attention(prep, Q, K, V, num_heads):
    # TODO(synk): mask path not implemented (module forward is exercised with mask=None).
    # TODO(synk): for self-attention (Q is K is V) a fused (3*d_model, d_model) weight would
    # collapse the three projections into one matmul with no extra activation traffic.
    B, S, d_model = Q.shape

    q = linear(Q.reshape(B * S, d_model), prep["wq"], prep["bq"], out_dtype=jnp.bfloat16)
    k = linear(K.reshape(B * S, d_model), prep["wk"], prep["bk"], out_dtype=jnp.bfloat16)
    v = linear(V.reshape(B * S, d_model), prep["wv"], prep["bv"], out_dtype=jnp.bfloat16)

    # Attention directly on the head-packed layout: no split_heads/combine_heads relayouts.
    attn = attention(q.reshape(B, S, d_model),
                     k.reshape(B, S, d_model),
                     v.reshape(B, S, d_model), num_heads)

    out = linear(attn.reshape(B * S, d_model), prep["wo"], prep["bo"], out_dtype=Q.dtype)
    return out.reshape(B, S, d_model)


# ----------------------------------------------------------------------------
# Pure-JAX f32 reference (correctness check)
# ----------------------------------------------------------------------------
def reference(params, Q, K, V, num_heads):
    B, S, d_model = Q.shape
    d_k = d_model // num_heads

    def lin(x, w, b):
        return x @ w.T + b

    def split(x):
        return x.reshape(B, S, num_heads, d_k).transpose(0, 2, 1, 3)

    q = split(lin(Q, params["wq"], params["bq"]))
    k = split(lin(K, params["wk"], params["bk"]))
    v = split(lin(V, params["wv"], params["bv"]))
    s = jnp.einsum("bhqd,bhkd->bhqk", q, k) / math.sqrt(d_k)
    p = jax.nn.softmax(s, axis=-1)
    a = jnp.einsum("bhqk,bhkd->bhqd", p, v)
    c = a.transpose(0, 2, 1, 3).reshape(B, S, d_model)
    return lin(c, params["wo"], params["bo"])


if __name__ == "__main__":
    B, S, d_model, num_heads = 2, 8, 32, 4

    key = jax.random.PRNGKey(0)
    keys = jax.random.split(key, 12)
    std = 1.0 / math.sqrt(d_model)

    params = {
        "wq": jax.random.uniform(keys[0], (d_model, d_model), jnp.float32, -std, std),
        "bq": jax.random.uniform(keys[1], (d_model,), jnp.float32, -std, std),
        "wk": jax.random.uniform(keys[2], (d_model, d_model), jnp.float32, -std, std),
        "bk": jax.random.uniform(keys[3], (d_model,), jnp.float32, -std, std),
        "wv": jax.random.uniform(keys[4], (d_model, d_model), jnp.float32, -std, std),
        "bv": jax.random.uniform(keys[5], (d_model,), jnp.float32, -std, std),
        "wo": jax.random.uniform(keys[6], (d_model, d_model), jnp.float32, -std, std),
        "bo": jax.random.uniform(keys[7], (d_model,), jnp.float32, -std, std),
    }

    Q = jax.random.normal(keys[8], (B, S, d_model), jnp.float32)
    K = jax.random.normal(keys[9], (B, S, d_model), jnp.float32)
    V = jax.random.normal(keys[10], (B, S, d_model), jnp.float32)

    prep = prepare_params(params, num_heads)
    out = multi_head_attention(prep, Q, K, V, num_heads)
    out = jax.block_until_ready(out)

    ref = reference(params, Q, K, V, num_heads)
    assert out.shape == (B, S, d_model)
    # Tolerance reflects bf16 MXU operands (f32 accumulation) throughout the pipeline.
    assert jnp.allclose(out, ref, atol=2e-2, rtol=2e-2), "mismatch vs reference"

    print("KERNEL_OK")
</pallas_src>

<mosaic_0001>
module attributes {stable_mosaic.version = 11 : i64} {
  func.func @_linear_kernel_scratch(%arg0: i32, %arg1: i32, %arg2: i32, %arg3: memref<16x32xf32, #tpu.memory_space<vmem>>, %arg4: memref<32x32xbf16, #tpu.memory_space<vmem>>, %arg5: memref<1x32xf32, #tpu.memory_space<vmem>>, %arg6: memref<16x32xbf16, #tpu.memory_space<vmem>>, %arg7: memref<16x32xf32, #tpu.memory_space<vmem>>) attributes {dimension_semantics = [#tpu.dimension_semantics<parallel>, #tpu.dimension_semantics<parallel>, #tpu.dimension_semantics<arbitrary>], iteration_bounds = array<i64: 1, 1, 1>, scalar_prefetch = 0 : i64, scratch_operands = 1 : i64, tpu.core_type = #tpu.core_type<tc>, window_params = [{transform_indices = @transform_0, window_bounds = array<i64: 16, 32>}, {transform_indices = @transform_1, window_bounds = array<i64: 32, 32>}, {transform_indices = @transform_2, window_bounds = array<i64: 1, 32>}, {transform_indices = @transform_3, window_bounds = array<i64: 16, 32>}]} {
    %c0_i32 = arith.constant 0 : i32
    %0 = arith.cmpi eq, %arg2, %c0_i32 : i32
    %1 = arith.extui %0 : i1 to i32
    %c0_i32_0 = arith.constant 0 : i32
    %2 = arith.cmpi ne, %1, %c0_i32_0 : i32
    scf.if %2 {
      %cst_10 = arith.constant 0.000000e+00 : f32
      %13 = vector.broadcast %cst_10 : f32 to vector<16x32xf32>
      %c0_11 = arith.constant 0 : index
      %c0_12 = arith.constant 0 : index
      %14 = vector.load %arg7[%c0_11, %c0_12] : memref<16x32xf32, #tpu.memory_space<vmem>>, vector<16x32xf32>
      tpu.vector_store %arg7[%c0_11, %c0_12], %13 {strides = array<i32>} : memref<16x32xf32, #tpu.memory_space<vmem>>, vector<16x32xf32>,
    } else {
    }
    %c0 = arith.constant 0 : index
    %c0_1 = arith.constant 0 : index
    %3 = vector.load %arg7[%c0, %c0_1] : memref<16x32xf32, #tpu.memory_space<vmem>>, vector<16x32xf32>
    %c0_2 = arith.constant 0 : index
    %c0_3 = arith.constant 0 : index
    %4 = vector.load %arg3[%c0_2, %c0_3] : memref<16x32xf32, #tpu.memory_space<vmem>>, vector<16x32xf32>
    %5 = arith.truncf %4 : vector<16x32xf32> to vector<16x32xbf16>
    %c0_4 = arith.constant 0 : index
    %c0_5 = arith.constant 0 : index
    %6 = vector.load %arg4[%c0_4, %c0_5] : memref<32x32xbf16, #tpu.memory_space<vmem>>, vector<32x32xbf16>
    %cst = arith.constant dense<0.000000e+00> : vector<16x32xf32>
    %7 = tpu.matmul %5, %6, %cst {dimension_numbers = #tpu.dot_dimension_numbers<[1], [1], [0], [0], [0, 0, 1, 0], [], []>} : vector<16x32xbf16>, vector<32x32xbf16>, vector<16x32xf32> -> vector<16x32xf32>
    %8 = arith.addf %3, %7 : vector<16x32xf32>
    %c0_6 = arith.constant 0 : index
    %c0_7 = arith.constant 0 : index
    %9 = vector.load %arg7[%c0_6, %c0_7] : memref<16x32xf32, #tpu.memory_space<vmem>>, vector<16x32xf32>
    tpu.vector_store %arg7[%c0_6, %c0_7], %8 {strides = array<i32>} : memref<16x32xf32, #tpu.memory_space<vmem>>, vector<16x32xf32>,
    %c0_i32_8 = arith.constant 0 : i32
    %10 = arith.cmpi eq, %arg2, %c0_i32_8 : i32
    %11 = arith.extui %10 : i1 to i32
    %c0_i32_9 = arith.constant 0 : i32
    %12 = arith.cmpi ne, %11, %c0_i32_9 : i32
    scf.if %12 {
      %c0_10 = arith.constant 0 : index
      %c0_11 = arith.constant 0 : index
      %13 = vector.load %arg7[%c0_10, %c0_11] : memref<16x32xf32, #tpu.memory_space<vmem>>, vector<16x32xf32>
      %c0_12 = arith.constant 0 : index
      %c0_13 = arith.constant 0 : index
      %14 = vector.load %arg5[%c0_12, %c0_13] : memref<1x32xf32, #tpu.memory_space<vmem>>, vector<1x32xf32>
      %15 = vector.broadcast %14 : vector<1x32xf32> to vector<16x32xf32>
      %16 = arith.addf %13, %15 : vector<16x32xf32>
      %17 = arith.truncf %16 : vector<16x32xf32> to vector<16x32xbf16>
      %c0_14 = arith.constant 0 : index
      %c0_15 = arith.constant 0 : index
      %18 = vector.load %arg6[%c0_14, %c0_15] : memref<16x32xbf16, #tpu.memory_space<vmem>>, vector<16x32xbf16>
      tpu.vector_store %arg6[%c0_14, %c0_15], %17 {strides = array<i32>} : memref<16x32xbf16, #tpu.memory_space<vmem>>, vector<16x32xbf16>,
    } else {
    }
    return
  }
  func.func @transform_0(%arg0: i32, %arg1: i32, %arg2: i32) -> (i32, i32) {
    %c0_i32 = arith.constant 0 : i32
    return %arg0, %arg2 : i32, i32
  }
  func.func @transform_1(%arg0: i32, %arg1: i32, %arg2: i32) -> (i32, i32) {
    %c0_i32 = arith.constant 0 : i32
    return %arg1, %arg2 : i32, i32
  }
  func.func @transform_2(%arg0: i32, %arg1: i32, %arg2: i32) -> (i32, i32) {
    %c0_i32 = arith.constant 0 : i32
    %c0_i32_0 = arith.constant 0 : i32
    return %c0_i32, %arg1 : i32, i32
  }
  func.func @transform_3(%arg0: i32, %arg1: i32, %arg2: i32) -> (i32, i32) {
    %c0_i32 = arith.constant 0 : i32
    return %arg0, %arg1 : i32, i32
  }
}

</mosaic_0001>

<bundles_post_ra>
// kernel: tpu_custom_call.1
= control target key start
LH: loop header
LB: loop body
LE: loop exit
PB: predicated region body
PF: predicated region fallthrough
CT: control target
= control target key end

     0   :  { %8 = vsyncpa [#allocation4], 0  ;;  %s289_s0 = inlined_call_operand.hbm [shape: f32[16,32], index: 0, kind: input, shape index: {}]   ;;  %s290_s1 = inlined_call_operand.hbm [shape: bf16[32,32], index: 1, kind: input, shape index: {}]   ;;  %s291_s2 = inlined_call_operand.vmem [shape: f32[1,32], index: 2, kind: input, shape index: {}]   ;;  %s292_s3 = inlined_call_operand.hbm [shape: bf16[16,32], index: 3, kind: output, shape index: {}]  }
   0x1   :  { %9 = vsyncpa [#allocation7], 0 }
   0x2   :  { %10 = vsyncpa [#allocation5], 0  ;;  %s15_s14 = sshll.u32 %s289_s0, 4  ;;  %s236_s15 = smov [#allocation3]   ;;  %s16_s14 = int_to_ptr.hbm [resolvable:$true] %s15_s14 }
   0x3   :  { %s17_s16 = sshll.u32 %s236_s15, 4  ;;  %s28_s19 = sshll.u32 %s290_s1, 4  ;;  %s18_s16 = int_to_ptr.vmem [resolvable:$true] %s17_s16  ;;  %s29_s19 = int_to_ptr.hbm [resolvable:$true] %s28_s19 }
   0x4   :  { %s237_s20 = smov 128   ;;  %s238_s21 = smov 8  }
   0x5   :  { %23 = dma.hbm_to_vmem [thread:$0]  %s16_s14, 256, %s18_s16, [#allocation4], %s237_s20, %s237_s20, %s238_s21  }
   0x6   :  { %s239_s22 = smov [#allocation6]   ;;  %s240_s24 = smov 64  }
   0x7   :  { %s30_s23 = sshll.u32 %s239_s22, 4  ;;  %s241_s25 = smov 4   ;;  %s31_s23 = int_to_ptr.vmem [resolvable:$true] %s30_s23 }
   0x8   :  { %36 = dma.hbm_to_vmem [thread:$0]  %s29_s19, 256, %s31_s23, [#allocation7], %s240_s24, %s240_s24, %s241_s25  }
   0x9   :  { %230 = dma.done.wait [#allocation4], 256  }
   0xa   :  { %231 = vsyncadd [#allocation4], 4294967040 }
   0xb   :  { %232 = dma.done.wait [#allocation7], 256  }
   0xc   :  { %233 = vsyncadd [#allocation7], 4294967040  ;;  %vm52_vm0 = vcmask 261120   ;;  %v242_v0 = vmov 0.0   ;;  %v148_v1 = vld [vmem:[#allocation6 + $0x8] sm:$0xff]  ;;  %v147_v3 = vld [vmem:[#allocation6] sm:$0xff] }
   0xd   :  { %53 = vst.msk [vmem:[#allocation2] sm:$0xff] %vm52_vm0, %v242_v0  ;;  %v82_v2 = vsel %vm52_vm0, %v148_v1, 0  ;;  %v79_v4 = vsel %vm52_vm0, %v147_v3, 0  ;;  %v57_v5 = vld [vmem:[#allocation3] sm:$0xff]  ;;  %v58_v6 = vld [vmem:[#allocation3 + $0x8] sm:$0xff]  ;;  %vm115_vm1 = vcmask 257024  }
   0xe   :  { %54 = vst.msk [vmem:[#allocation2 + $0x8] sm:$0xff] %vm52_vm0, %v242_v0  ;;  %90 = vmatpush.bf16.xpose.msra.mxu0 %v82_v2  ;;  %v59_v7 = vpack.c.bf16 %v58_v6, %v57_v5  ;;  %v157_v12 = vld [vmem:[%s291_s2] ss:$0 sm:$0xff]  ;;  %s243_s26 = smov [#allocation8]   ;;  %s124_s30 = sshll.u32 %s292_s3, 4  ;;  %s125_s30 = int_to_ptr.hbm [resolvable:$true] %s124_s30 }
   0xf   :  { %s122_s27 = sshll.u32 %s243_s26, 4  ;;  %s123_s27 = int_to_ptr.vmem [resolvable:$true] %s122_s27 }
  0x14   :  { %v55_v8 = vld [vmem:[#allocation2] sm:$0xff] }
  0x15   :  { %v56_v11 = vld [vmem:[#allocation2 + $0x8] sm:$0xff] }
  0x16   :  { %91 = vmatpush.bf16.xpose.msra.mxu0 %v79_v4 }
  0x1d   :  { %146 = vmatmul.msk.bf16.vlgmr.msra.gmra.mxu0 %vm52_vm0, %v59_v7 }
  0x9a   :  { %v93_v9 = vpop.f32.mrf.mxu0 }
  0x9b   :  { %v98_v10 = vadd.f32 %v93_v9, %v55_v8 }
  0x9d   :  { %100 = vst.msk [vmem:[#allocation2] sm:$0xff] %vm52_vm0, %v98_v10 }
  0xa2   :  { %v95_v13 = vpop.f32.mrf.mxu0 }
  0xa3   :  { %v99_v14 = vadd.f32 %v95_v13, %v56_v11 }
  0xa4   :  { %v105_v15 = vld [vmem:[#allocation2] sm:$0xff] }
  0xa5   :  { %101 = vst.msk [vmem:[#allocation2 + $0x8] sm:$0xff] %vm52_vm0, %v99_v14  ;;  %v111_v16 = vadd.f32 %v157_v12, %v105_v15 }
  0xa7   :  { %v113_v17 = vpack.c.bf16 %v111_v16, %v111_v16 }
  0xa9   :  { %116 = vst.msk [vmem:[#allocation8] sm:$0xf] %vm115_vm1, %v113_v17 }
  0xac   :  { %v106_v18 = vld [vmem:[#allocation2 + $0x8] sm:$0xff] }
  0xad   :  { %v112_v19 = vadd.f32 %v157_v12, %v106_v18 }
  0xaf   :  { %v114_v20 = vpack.c.bf16 %v112_v19, %v112_v19 }
  0xb1   :  { %117 = vst.msk [vmem:[#allocation8 + $0x4] sm:$0xf] %vm115_vm1, %v114_v20 }
  0xb2   :  { %130 = dma.vmem_to_hbm [thread:$0]  %s123_s27, 128, %s125_s30, [#allocation5], %s240_s24, %s240_s24, %s241_s25  }
  0xb3   :  { %234 = dma.done.wait [#allocation5], 128  }
  0xb4   :  { %235 = vsyncadd [#allocation5], 4294967168 }
  0xb5   :  { %135 = vsyncpa [#allocation4], 1 }
  0xb6   :  { %136 = vsyncpa [#allocation7], 1 }
  0xb7   :  { %137 = vsyncpa [#allocation5], 1 }

</bundles_post_ra>
